<compile_context>
chip_gen: v7x
topology: tpu7x:2x2x1
jax: 0.10.0
libtpu: 0.0.40
codegen_flags: <defaults>
</compile_context>

<pallas_src>
import functools
import math

import jax
import jax.numpy as jnp
from jax.experimental import pallas as pl
from jax.experimental.pallas import tpu as pltpu


def _round_up(x: int, m: int) -> int:
    return ((x + m - 1) // m) * m


def _fused_heads_kernel(x_ref, w_ref, b_ref, mask_ref, seg_ref, segt_ref, o_ref,
                        *, task_spans, softmax_flags):
    """All task heads fused: one matmul, one exp, MXU segment-softmax.

    x_ref:    (bm, F)       f32   activations
    w_ref:    (F, N_pad)    bf16  all heads packed column-wise
    b_ref:    (1, N_pad)    f32   packed biases
    mask_ref: (1, N_pad)    f32   1.0 on softmax-task columns, 0.0 elsewhere
    seg_ref:  (N_pad, T_pad) f32  one-hot: column n belongs to softmax task t
    segt_ref: (T_pad, N_pad) f32  transpose of seg (precomputed, no XLU transpose)
    o_ref:    (bm, N_pad)   f32
    task_spans / softmax_flags are static Python tuples (baked at trace time).
    """
    # bf16 MXU operands, f32 accumulation.
    x = x_ref[...].astype(jnp.bfloat16)
    logits = jnp.dot(x, w_ref[...], preferred_element_type=jnp.float32) + b_ref[...]

    mask_f = mask_ref[...]          # (1, N_pad)
    segt = segt_ref[...]            # (T_pad, N_pad)

    big = jnp.float32(1e30)
    neg_big = jnp.float32(-1e30)

    # Per-row, per-task max tile (numerical stability).  Non-softmax and
    # padding columns get a huge "max" so exp() underflows to exactly 0 there
    # (keeps the MXU segment-sum free of inf/NaN).  Per-task maxima are
    # accumulated by addition over disjoint column sets (no chained selects).
    m_tile = (1.0 - mask_f) * big   # (1, N_pad), broadcasts over rows
    for t, ((start, end), do_sm) in enumerate(zip(task_spans, softmax_flags)):
        if not do_sm:
            continue
        row = segt[t:t + 1, :]                                   # (1, N_pad) indicator
        m_t = jnp.max(jnp.where(row > 0.0, logits, neg_big),
                      axis=-1, keepdims=True)                    # (bm, 1)
        m_tile = m_tile + m_t * row

    # ONE exp pass over the whole tile (0 outside softmax columns).
    e = jnp.exp(logits - m_tile)

    # Per-task denominators and their column broadcast on the MXU.
    denom = jnp.dot(e, seg_ref[...], preferred_element_type=jnp.float32)   # (bm, T_pad)
    denom_b = jnp.dot(denom, segt, preferred_element_type=jnp.float32)     # (bm, N_pad)
    inv = pl.reciprocal(denom_b + (1.0 - mask_f), approx=True)             # EUP slot

    # ONE final select: softmax columns vs raw-linear columns.
    o_ref[...] = jnp.where(mask_f > 0.0, e * inv, logits).astype(o_ref.dtype)


def _fused_forward(x, w_packed, b_packed, sm_mask, seg, seg_t,
                   *, task_spans, softmax_flags):
    """One pallas_call over the batch; returns the packed (B, N_pad) output."""
    B, F = x.shape
    n_pad = w_packed.shape[1]
    t_pad = seg.shape[1]

    # Batch tile: multiple of 8, capped at 512 rows.  For B >= 16, make sure
    # the (parallel) batch grid has at least 2 steps so v7x's two TensorCores
    # both get work.  Ragged last tile handled by Pallas masked stores (no
    # host-side padding copy of x).
    bm = min(512, _round_up(B, 8))
    if B >= 16:
        bm = min(bm, _round_up(pl.cdiv(B, 2), 8))
    grid = (pl.cdiv(B, bm),)

    # Explicit VMEM budget (double-buffered inputs/outputs + temp headroom).
    # Covers v5e's 16 MiB scoped default; clamped to v7x's 64 MiB physical.
    # TODO(synk): add an N-tiling grid axis (spans aligned to tile boundaries)
    # once F * N_pad grows beyond the VMEM budget; not needed at these sizes.
    vmem_bytes = (
        2 * bm * F * 4                      # x tiles (f32)
        + 2 * F * n_pad * 2                 # packed weights (bf16)
        + 2 * 2 * n_pad * 4                 # bias + mask rows
        + 2 * 2 * n_pad * t_pad * 4         # seg + seg^T
        + 2 * bm * n_pad * 4                # output tiles
        + 8 * bm * n_pad * 4                # in-kernel temporaries headroom
    )
    vmem_limit = int(min(max(vmem_bytes + (1 << 20), 16 << 20), 64 << 20))

    kernel = functools.partial(
        _fused_heads_kernel, task_spans=task_spans, softmax_flags=softmax_flags
    )

    out = pl.pallas_call(
        kernel,
        out_shape=jax.ShapeDtypeStruct((B, n_pad), jnp.float32),
        grid=grid,
        in_specs=[
            pl.BlockSpec((bm, F), lambda i: (i, 0)),
            pl.BlockSpec((F, n_pad), lambda i: (0, 0)),
            pl.BlockSpec((1, n_pad), lambda i: (0, 0)),
            pl.BlockSpec((1, n_pad), lambda i: (0, 0)),
            pl.BlockSpec((n_pad, t_pad), lambda i: (0, 0)),
            pl.BlockSpec((t_pad, n_pad), lambda i: (0, 0)),
        ],
        out_specs=pl.BlockSpec((bm, n_pad), lambda i: (i, 0)),
        compiler_params=pltpu.CompilerParams(
            dimension_semantics=("parallel",),
            vmem_limit_bytes=vmem_limit,
        ),
    )(x, w_packed, b_packed, sm_mask, seg, seg_t)
    return out


class MultitaskPredictorPallas:
    """JAX/Pallas port of MultitaskPredictor (all heads fused in one kernel)."""

    def __init__(self, in_features: int, n_labels_in_each_task, key):
        self.in_features = in_features
        self.n_labels_in_each_task = list(n_labels_in_each_task)
        n_tasks = len(self.n_labels_in_each_task)

        bound = 1.0 / math.sqrt(in_features)
        self.params = []  # per-task f32 (W: (F, n), b: (1, n)) for reference use
        for n_labels in self.n_labels_in_each_task:
            key, wk, bk = jax.random.split(key, 3)
            w = jax.random.uniform(
                wk, (in_features, n_labels), jnp.float32, -bound, bound
            )
            b = jax.random.uniform(bk, (1, n_labels), jnp.float32, -bound, bound)
            self.params.append((w, b))

        # Pack all heads column-wise; pad total label width to a multiple of
        # 128 for lane-dense output stores.  Padding weights/bias are zero.
        self.n_total = sum(self.n_labels_in_each_task)
        n_pad = max(128, _round_up(self.n_total, 128))
        t_pad = max(128, _round_up(n_tasks, 128))

        w_packed = jnp.zeros((in_features, n_pad), jnp.float32)
        b_packed = jnp.zeros((1, n_pad), jnp.float32)
        sm_mask = jnp.zeros((1, n_pad), jnp.float32)
        seg = jnp.zeros((n_pad, t_pad), jnp.float32)

        spans = []
        off = 0
        for t, ((w, b), n_labels) in enumerate(
            zip(self.params, self.n_labels_in_each_task)
        ):
            w_packed = w_packed.at[:, off:off + n_labels].set(w)
            b_packed = b_packed.at[:, off:off + n_labels].set(b)
            if n_labels >= 2:
                sm_mask = sm_mask.at[:, off:off + n_labels].set(1.0)
                seg = seg.at[off:off + n_labels, t].set(1.0)
            spans.append((off, off + n_labels))
            off += n_labels

        self.w_packed = w_packed.astype(jnp.bfloat16)   # bf16 MXU operands
        self.b_packed = b_packed
        self.sm_mask = sm_mask
        self.seg = seg
        self.seg_t = jnp.asarray(seg.T)                  # precomputed transpose
        self.task_spans = tuple(spans)
        self.softmax_flags = tuple(n >= 2 for n in self.n_labels_in_each_task)

        fwd = functools.partial(
            _fused_forward,
            task_spans=self.task_spans,
            softmax_flags=self.softmax_flags,
        )

        def forward_list(x, w, b, m, s, st):
            out = fwd(x, w, b, m, s, st)
            return [out[:, lo:hi] for (lo, hi) in self.task_spans]

        def forward_packed(x, w, b, m, s, st):
            out = fwd(x, w, b, m, s, st)
            return out[:, :self.n_total]

        # Whole forward (pallas_call + slicing) compiled as one dispatch.
        self._forward = jax.jit(forward_list)
        self._forward_packed = jax.jit(forward_packed)

    def __call__(self, x):
        """Module semantics: list of per-task predictions."""
        return self._forward(x, self.w_packed, self.b_packed,
                             self.sm_mask, self.seg, self.seg_t)

    def forward_packed(self, x):
        """Fast path: single (B, n_total) buffer (one slice, no per-task copies)."""
        return self._forward_packed(x, self.w_packed, self.b_packed,
                                    self.sm_mask, self.seg, self.seg_t)


def _reference_forward(x, params, n_labels_in_each_task):
    """Pure-JAX f32 reference for correctness checking."""
    outs = []
    for (w, b), n_labels in zip(params, n_labels_in_each_task):
        logits = x @ w + b
        if n_labels >= 2:
            outs.append(jax.nn.softmax(logits, axis=-1))
        else:
            outs.append(logits)
    return outs


if __name__ == "__main__":
    key = jax.random.PRNGKey(0)
    key, xk, pk = jax.random.split(key, 3)

    batch = 8
    in_features = 32
    n_labels_in_each_task = [3, 5, 1]  # tasks with >=2 labels get softmax

    x = jax.random.normal(xk, (batch, in_features), jnp.float32)

    model = MultitaskPredictorPallas(in_features, n_labels_in_each_task, pk)
    preds = model(x)
    preds = [jax.block_until_ready(p) for p in preds]

    # Verify against the f32 reference.  Kernel uses bf16 matmul operands and
    # an approximate (EUP) reciprocal, so tolerance is relaxed vs pure f32.
    ref = _reference_forward(x, model.params, n_labels_in_each_task)
    for p, r, n_labels in zip(preds, ref, n_labels_in_each_task):
        assert p.shape == r.shape, (p.shape, r.shape)
        err = float(jnp.max(jnp.abs(p - r)))
        assert err < 2e-2, err
        if n_labels >= 2:  # softmax rows must normalize
            rs_err = float(jnp.max(jnp.abs(jnp.sum(p, axis=-1) - 1.0)))
            assert rs_err < 2e-2, rs_err

    # Exercise the packed (single-slice) fast path as well.
    packed = jax.block_until_ready(model.forward_packed(x))
    assert packed.shape == (batch, sum(n_labels_in_each_task))

    print("KERNEL_OK")
</pallas_src>

<mosaic_0001>
module attributes {stable_mosaic.version = 11 : i64} {
  func.func @_fused_heads_kernel(%arg0: i32, %arg1: memref<8x32xf32, #tpu.memory_space<vmem>>, %arg2: memref<32x128xbf16, #tpu.memory_space<vmem>>, %arg3: memref<1x128xf32, #tpu.memory_space<vmem>>, %arg4: memref<1x128xf32, #tpu.memory_space<vmem>>, %arg5: memref<128x128xf32, #tpu.memory_space<vmem>>, %arg6: memref<128x128xf32, #tpu.memory_space<vmem>>, %arg7: memref<8x128xf32, #tpu.memory_space<vmem>>) attributes {dimension_semantics = [#tpu.dimension_semantics<parallel>], iteration_bounds = array<i64: 1>, scalar_prefetch = 0 : i64, scratch_operands = 0 : i64, tpu.core_type = #tpu.core_type<tc>, window_params = [{transform_indices = @transform_0, window_bounds = array<i64: 8, 32>}, {pipeline_mode = #tpu.pipeline_mode<synchronous>, transform_indices = @transform_1, window_bounds = array<i64: 32, 128>}, {pipeline_mode = #tpu.pipeline_mode<synchronous>, transform_indices = @transform_2, window_bounds = array<i64: 1, 128>}, {pipeline_mode = #tpu.pipeline_mode<synchronous>, transform_indices = @transform_3, window_bounds = array<i64: 1, 128>}, {pipeline_mode = #tpu.pipeline_mode<synchronous>, transform_indices = @transform_4, window_bounds = array<i64: 128, 128>}, {pipeline_mode = #tpu.pipeline_mode<synchronous>, transform_indices = @transform_5, window_bounds = array<i64: 128, 128>}, {transform_indices = @transform_6, window_bounds = array<i64: 8, 128>}]} {
    %c0 = arith.constant 0 : index
    %c0_0 = arith.constant 0 : index
    %0 = vector.load %arg1[%c0, %c0_0] : memref<8x32xf32, #tpu.memory_space<vmem>>, vector<8x32xf32>
    %1 = arith.truncf %0 : vector<8x32xf32> to vector<8x32xbf16>
    %c0_1 = arith.constant 0 : index
    %c0_2 = arith.constant 0 : index
    %2 = vector.load %arg2[%c0_1, %c0_2] : memref<32x128xbf16, #tpu.memory_space<vmem>>, vector<32x128xbf16>
    %cst = arith.constant dense<0.000000e+00> : vector<8x128xf32>
    %3 = tpu.matmul %1, %2, %cst {dimension_numbers = #tpu.dot_dimension_numbers<[1], [0], [0], [1], [0, 0, 1, 1], [], []>} : vector<8x32xbf16>, vector<32x128xbf16>, vector<8x128xf32> -> vector<8x128xf32>
    %c0_3 = arith.constant 0 : index
    %c0_4 = arith.constant 0 : index
    %4 = vector.load %arg3[%c0_3, %c0_4] : memref<1x128xf32, #tpu.memory_space<vmem>>, vector<1x128xf32>
    %5 = vector.broadcast %4 : vector<1x128xf32> to vector<8x128xf32>
    %6 = arith.addf %3, %5 : vector<8x128xf32>
    %c0_5 = arith.constant 0 : index
    %c0_6 = arith.constant 0 : index
    %7 = vector.load %arg4[%c0_5, %c0_6] : memref<1x128xf32, #tpu.memory_space<vmem>>, vector<1x128xf32>
    %c0_7 = arith.constant 0 : index
    %c0_8 = arith.constant 0 : index
    %8 = vector.load %arg6[%c0_7, %c0_8] : memref<128x128xf32, #tpu.memory_space<vmem>>, vector<128x128xf32>
    %cst_9 = arith.constant 1.000000e+00 : f32
    %9 = vector.broadcast %cst_9 : f32 to vector<1x128xf32>
    %10 = arith.subf %9, %7 : vector<1x128xf32>
    %cst_10 = arith.constant 1.000000e+30 : f32
    %11 = vector.broadcast %cst_10 : f32 to vector<1x128xf32>
    %12 = arith.mulf %10, %11 : vector<1x128xf32>
    %13 = vector.extract_strided_slice %8 {offsets = [0, 0], sizes = [1, 128], strides = [1, 1]} : vector<128x128xf32> to vector<1x128xf32>
    %cst_11 = arith.constant 0.000000e+00 : f32
    %14 = vector.broadcast %cst_11 : f32 to vector<1x128xf32>
    %15 = arith.cmpf ogt, %13, %14 : vector<1x128xf32>
    %cst_12 = arith.constant -1.000000e+30 : f32
    %16 = vector.shape_cast %15 : vector<1x128xi1> to vector<1x128xi1>
    %17 = vector.broadcast %16 : vector<1x128xi1> to vector<8x128xi1>
    %18 = vector.broadcast %cst_12 : f32 to vector<8x128xf32>
    %19 = arith.select %17, %6, %18 : vector<8x128xi1>, vector<8x128xf32>
    %cst_13 = arith.constant dense<0xFF800000> : vector<8xf32>
    %20 = vector.multi_reduction <maximumf>, %19, %cst_13 [1] : vector<8x128xf32> to vector<8xf32>
    %21 = vector.shape_cast %20 : vector<8xf32> to vector<8x1xf32>
    %22 = vector.broadcast %21 : vector<8x1xf32> to vector<8x128xf32>
    %23 = vector.broadcast %13 : vector<1x128xf32> to vector<8x128xf32>
    %24 = arith.mulf %22, %23 : vector<8x128xf32>
    %25 = vector.broadcast %12 : vector<1x128xf32> to vector<8x128xf32>
    %26 = arith.addf %25, %24 : vector<8x128xf32>
    %27 = vector.extract_strided_slice %8 {offsets = [1, 0], sizes = [1, 128], strides = [1, 1]} : vector<128x128xf32> to vector<1x128xf32>
    %cst_14 = arith.constant 0.000000e+00 : f32
    %28 = vector.broadcast %cst_14 : f32 to vector<1x128xf32>
    %29 = arith.cmpf ogt, %27, %28 : vector<1x128xf32>
    %cst_15 = arith.constant -1.000000e+30 : f32
    %30 = vector.shape_cast %29 : vector<1x128xi1> to vector<1x128xi1>
    %31 = vector.broadcast %30 : vector<1x128xi1> to vector<8x128xi1>
    %32 = vector.broadcast %cst_15 : f32 to vector<8x128xf32>
    %33 = arith.select %31, %6, %32 : vector<8x128xi1>, vector<8x128xf32>
    %cst_16 = arith.constant dense<0xFF800000> : vector<8xf32>
    %34 = vector.multi_reduction <maximumf>, %33, %cst_16 [1] : vector<8x128xf32> to vector<8xf32>
    %35 = vector.shape_cast %34 : vector<8xf32> to vector<8x1xf32>
    %36 = vector.broadcast %35 : vector<8x1xf32> to vector<8x128xf32>
    %37 = vector.broadcast %27 : vector<1x128xf32> to vector<8x128xf32>
    %38 = arith.mulf %36, %37 : vector<8x128xf32>
    %39 = arith.addf %26, %38 : vector<8x128xf32>
    %40 = arith.subf %6, %39 : vector<8x128xf32>
    %41 = math.exp %40 : vector<8x128xf32>
    %c0_17 = arith.constant 0 : index
    %c0_18 = arith.constant 0 : index
    %42 = vector.load %arg5[%c0_17, %c0_18] : memref<128x128xf32, #tpu.memory_space<vmem>>, vector<128x128xf32>
    %cst_19 = arith.constant dense<0.000000e+00> : vector<8x128xf32>
    %43 = tpu.matmul %41, %42, %cst_19 {dimension_numbers = #tpu.dot_dimension_numbers<[1], [0], [0], [1], [0, 0, 1, 1], [], []>} : vector<8x128xf32>, vector<128x128xf32>, vector<8x128xf32> -> vector<8x128xf32>
    %cst_20 = arith.constant dense<0.000000e+00> : vector<8x128xf32>
    %44 = tpu.matmul %43, %8, %cst_20 {dimension_numbers = #tpu.dot_dimension_numbers<[1], [0], [0], [1], [0, 0, 1, 1], [], []>} : vector<8x128xf32>, vector<128x128xf32>, vector<8x128xf32> -> vector<8x128xf32>
    %cst_21 = arith.constant 1.000000e+00 : f32
    %45 = vector.broadcast %cst_21 : f32 to vector<1x128xf32>
    %46 = arith.subf %45, %7 : vector<1x128xf32>
    %47 = vector.broadcast %46 : vector<1x128xf32> to vector<8x128xf32>
    %48 = arith.addf %44, %47 : vector<8x128xf32>
    %49 = tpu.reciprocal %48 {approx = true} : vector<8x128xf32> -> vector<8x128xf32>
    %cst_22 = arith.constant 0.000000e+00 : f32
    %50 = vector.broadcast %cst_22 : f32 to vector<1x128xf32>
    %51 = arith.cmpf ogt, %7, %50 : vector<1x128xf32>
    %52 = arith.mulf %41, %49 : vector<8x128xf32>
    %53 = vector.shape_cast %51 : vector<1x128xi1> to vector<1x128xi1>
    %54 = vector.broadcast %53 : vector<1x128xi1> to vector<8x128xi1>
    %55 = arith.select %54, %52, %6 : vector<8x128xi1>, vector<8x128xf32>
    %c0_23 = arith.constant 0 : index
    %c0_24 = arith.constant 0 : index
    %56 = vector.load %arg7[%c0_23, %c0_24] : memref<8x128xf32, #tpu.memory_space<vmem>>, vector<8x128xf32>
    tpu.vector_store %arg7[%c0_23, %c0_24], %55 {strides = array<i32>} : memref<8x128xf32, #tpu.memory_space<vmem>>, vector<8x128xf32>,
    return
  }
  func.func @transform_0(%arg0: i32) -> (i32, i32) {
    %c0_i32 = arith.constant 0 : i32
    %c0_i32_0 = arith.constant 0 : i32
    return %arg0, %c0_i32 : i32, i32
  }
  func.func @transform_1(%arg0: i32) -> (i32, i32) {
    %c0_i32 = arith.constant 0 : i32
    %c0_i32_0 = arith.constant 0 : i32
    %c0_i32_1 = arith.constant 0 : i32
    return %c0_i32, %c0_i32_0 : i32, i32
  }
  func.func @transform_2(%arg0: i32) -> (i32, i32) {
    %c0_i32 = arith.constant 0 : i32
    %c0_i32_0 = arith.constant 0 : i32
    %c0_i32_1 = arith.constant 0 : i32
    return %c0_i32, %c0_i32_0 : i32, i32
  }
  func.func @transform_3(%arg0: i32) -> (i32, i32) {
    %c0_i32 = arith.constant 0 : i32
    %c0_i32_0 = arith.constant 0 : i32
    %c0_i32_1 = arith.constant 0 : i32
    return %c0_i32, %c0_i32_0 : i32, i32
  }
  func.func @transform_4(%arg0: i32) -> (i32, i32) {
    %c0_i32 = arith.constant 0 : i32
    %c0_i32_0 = arith.constant 0 : i32
    %c0_i32_1 = arith.constant 0 : i32
    return %c0_i32, %c0_i32_0 : i32, i32
  }
  func.func @transform_5(%arg0: i32) -> (i32, i32) {
    %c0_i32 = arith.constant 0 : i32
    %c0_i32_0 = arith.constant 0 : i32
    %c0_i32_1 = arith.constant 0 : i32
    return %c0_i32, %c0_i32_0 : i32, i32
  }
  func.func @transform_6(%arg0: i32) -> (i32, i32) {
    %c0_i32 = arith.constant 0 : i32
    %c0_i32_0 = arith.constant 0 : i32
    return %arg0, %c0_i32 : i32, i32
  }
}

</mosaic_0001>

<bundles_post_ra>
// kernel: forward_list.1
= control target key start
LH: loop header
LB: loop body
LE: loop exit
PB: predicated region body
PF: predicated region fallthrough
CT: control target
= control target key end

     0   :  { %11 = vsyncpa [#allocation3], 0  ;;  %s817_s0 = inlined_call_operand.hbm [shape: f32[8,32], index: 0, kind: input, shape index: {}]   ;;  %s818_s1 = inlined_call_operand.hbm [shape: bf16[32,128], index: 1, kind: input, shape index: {}]   ;;  %s819_s2 = inlined_call_operand.vmem [shape: f32[1,128], index: 2, kind: input, shape index: {}]   ;;  %s820_s3 = inlined_call_operand.vmem [shape: f32[1,128], index: 3, kind: input, shape index: {}]   ;;  %s821_s4 = inlined_call_operand.hbm [shape: f32[128,128], index: 4, kind: input, shape index: {}]   ;;  %s822_s5 = inlined_call_operand.hbm [shape: f32[128,128], index: 5, kind: input, shape index: {}]   ;;  %s823_s6 = inlined_call_operand.vmem [shape: f32[8,128], index: 6, kind: output, shape index: {}]  }
   0x1   :  { %12 = vsyncpa [#allocation5], 0 }
   0x2   :  { %13 = vsyncpa [#allocation8], 0  ;;  %s663_s21 = smov [#allocation4]   ;;  %s569_s25 = scalar_lea.hbm %s818_s1, 256 }
   0x3   :  { %s29_s22 = sshll.u32 %s663_s21, 4  ;;  %p570_p0 = scmp.ne.s32.totalorder %s818_s1, %s569_s25  ;;  %s30_s22 = int_to_ptr.vmem [resolvable:$true] %s29_s22 }
   0x4   :  { %p573_p1 = scmp.lt.u32.totalorder %s569_s25, %s818_s1 }
   0x6   :  { %p575_p2 = pnand %p573_p1, %p570_p0 }
   0x8   :  { %578 = shalt.err (!%p575_p2)
}
   0x9   :  { %s579_s30 = scalar_lea.vmem %s30_s22, 256  ;;  %p584_p4 = scmp.lt.s32.totalorder %s30_s22, %s30_s22 }
   0xa   :  { %p580_p3 = scmp.ne.s32.totalorder %s30_s22, %s579_s30  ;;  %p585_p5 = scmp.lt.s32.totalorder %s579_s30, %s579_s30 }
   0xc   :  { %p586_p6 = por %p585_p5, %p584_p4 }
   0xe   :  { %p587_p7 = pnand %p586_p6, %p580_p3 }
  0x10   :  { %590 = shalt.err (!%p587_p7)
}
  0x11   :  { %s664_s7 = smov 64   ;;  %s665_s8 = smov 4  }
  0x12   :  { %35 = dma.hbm_to_vmem [thread:$0]  %s818_s1, 256, %s30_s22, [#allocation5], %s664_s7, %s664_s7, %s665_s8  }
  0x13   :  { %s666_s11 = smov [#allocation2]   ;;  %s667_s13 = smov [#allocation6]  }
  0x14   :  { %s20_s12 = sshll.u32 %s666_s11, 4  ;;  %s45_s14 = sshll.u32 %s667_s13, 4  ;;  %s21_s12 = int_to_ptr.vmem [resolvable:$true] %s20_s12  ;;  %s46_s14 = int_to_ptr.vmem [resolvable:$true] %s45_s14 }
  0x15   :  { %s591_s17 = scalar_lea.hbm %s817_s0, 128 }
  0x16   :  { %p592_p8 = scmp.ne.s32.totalorder %s817_s0, %s591_s17  ;;  %p595_p9 = scmp.lt.u32.totalorder %s591_s17, %s817_s0 }
  0x18   :  { %p597_p10 = pnand %p595_p9, %p592_p8 }
  0x1a   :  { %600 = shalt.err (!%p597_p10)
}
  0x1b   :  { %s601_s1 = scalar_lea.vmem %s21_s12, 128  ;;  %p606_p12 = scmp.lt.s32.totalorder %s21_s12, %s21_s12 }
  0x1c   :  { %p602_p11 = scmp.ne.s32.totalorder %s21_s12, %s601_s1  ;;  %p607_p13 = scmp.lt.s32.totalorder %s601_s1, %s601_s1 }
  0x1e   :  { %p608_p0 = por %p607_p13, %p606_p12 }
  0x20   :  { %p609_p1 = pnand %p608_p0, %p602_p11 }
  0x22   :  { %612 = shalt.err (!%p609_p1)
}
  0x23   :  { %23 = dma.hbm_to_vmem [thread:$0]  %s817_s0, 128, %s21_s12, [#allocation3]  }
  0x24   :  { %s613_s26 = scalar_lea.hbm %s821_s4, 2048 }
  0x25   :  { %p614_p2 = scmp.ne.s32.totalorder %s821_s4, %s613_s26  ;;  %p617_p3 = scmp.lt.u32.totalorder %s613_s26, %s821_s4 }
  0x27   :  { %p619_p4 = pnand %p617_p3, %p614_p2 }
  0x29   :  { %622 = shalt.err (!%p619_p4)
}
  0x2a   :  { %s623_s7 = scalar_lea.vmem %s46_s14, 2048  ;;  %p628_p6 = scmp.lt.s32.totalorder %s46_s14, %s46_s14 }
  0x2b   :  { %p624_p5 = scmp.ne.s32.totalorder %s46_s14, %s623_s7  ;;  %p629_p7 = scmp.lt.s32.totalorder %s623_s7, %s623_s7 }
  0x2d   :  { %p630_p8 = por %p629_p7, %p628_p6 }
  0x2f   :  { %p631_p9 = pnand %p630_p8, %p624_p5 }
  0x31   :  { %634 = shalt.err (!%p631_p9)
}
  0x32   :  { %s668_s0 = smov 128   ;;  %s669_s8 = smov 8  }
  0x33   :  { %51 = dma.hbm_to_vmem [thread:$0]  %s821_s4, 2048, %s46_s14, [#allocation5], %s668_s0, %s668_s0, %s669_s8  }
  0x34   :  { %s670_s11 = smov [#allocation7]   ;;  %s635_s16 = scalar_lea.hbm %s822_s5, 2048 }
  0x35   :  { %s57_s12 = sshll.u32 %s670_s11, 4  ;;  %p636_p10 = scmp.ne.s32.totalorder %s822_s5, %s635_s16  ;;  %s58_s12 = int_to_ptr.vmem [resolvable:$true] %s57_s12 }
  0x36   :  { %p639_p11 = scmp.lt.u32.totalorder %s635_s16, %s822_s5 }
  0x38   :  { %p641_p12 = pnand %p639_p11, %p636_p10 }
  0x3a   :  { %644 = shalt.err (!%p641_p12)
}
  0x3b   :  { %s645_s21 = scalar_lea.vmem %s58_s12, 2048  ;;  %p650_p0 = scmp.lt.s32.totalorder %s58_s12, %s58_s12 }
  0x3c   :  { %p646_p13 = scmp.ne.s32.totalorder %s58_s12, %s645_s21  ;;  %p651_p1 = scmp.lt.s32.totalorder %s645_s21, %s645_s21 }
  0x3e   :  { %p652_p2 = por %p651_p1, %p650_p0 }
  0x40   :  { %p653_p3 = pnand %p652_p2, %p646_p13 }
  0x42   :  { %656 = shalt.err (!%p653_p3)
}
  0x43   :  { %63 = dma.hbm_to_vmem [thread:$0]  %s822_s5, 2048, %s58_s12, [#allocation8], %s668_s0, %s668_s0, %s669_s8  }
  0x44   :  { %657 = dma.done.wait [#allocation3], 128  }
  0x45   :  { %658 = vsyncadd [#allocation3], 4294967168 }
  0x46   :  { %659 = dma.done.wait [#allocation5], 2304  }
  0x47   :  { %660 = vsyncadd [#allocation5], 4294964992 }
  0x48   :  { %661 = dma.done.wait [#allocation8], 2048  }
  0x49   :  { %662 = vsyncadd [#allocation8], 4294965248  ;;  %v671_v0 = vmov 0.0   ;;  %vm672_vm0 = vmmov 0   ;;  %v563_v1 = vld [vmem:[#allocation4] sm:$0xff]   ;;  %v564_v2 = vld [vmem:[#allocation4 + $0x8] sm:$0xff]   ;;  %v167_v15 = vlaneseq }
  0x4a   :  { %425 = vmatprep.subr.bf16.mxu0 %v671_v0  ;;  %429 = vmatprep.mubr.msk.bf16.mxu0 %vm672_vm0, %v671_v0  ;;  %v77_v3 = vld [vmem:[#allocation2] sm:$0xff]  ;;  %vm102_vm1 = vcmask 261120   ;;  %v673_v6 = vmov 0   ;;  %v204_v8 = vld [vmem:[#allocation6] sm:$0xff]  ;;  %v206_v10 = vld [vmem:[#allocation6 + $0x10] sm:$0xff]  ;;  %v674_v11 = vmov 0.0|0.0  }
  0x4b   :  { %465 = vmatprep.mubr.msk.f32.mxu1 %vm672_vm0, %v671_v0  ;;  %426 = vmatpush3.bf16.msra.mxu0 %v563_v1  ;;  %v78_v4 = vpack.c.bf16 %v77_v3, %v77_v3  ;;  %v761_v5 = vld [vmem:[%s820_s3] sm:$0x1]  ;;  %v207_v13 = vld [vmem:[#allocation6 + $0x18] sm:$0xff]  ;;  %v770_v16 = vld [vmem:[#allocation7] sm:$0xff]  ;;  %v772_v17 = vshrl.u32 %v167_v15, 7 }
  0x4c   :  { %427 = vmatprep.subr.bf16.mxu0 %v671_v0  ;;  %vm367_vm2 = vcmp.gt.f32.partialorder %v761_v5, 0.0  ;;  %v205_v9 = vld [vmem:[#allocation6 + $0x8] sm:$0xff]  ;;  %503 = vmatprep.subr.bf16.mxu1 %v674_v11  ;;  %v507_v14 = vpack.c.bf16 %v207_v13, %v206_v10  ;;  %vm165_vm3 = vcmp.gt.f32.partialorder %v770_v16, 0.0  ;;  %v208_v31 = vld [vmem:[#allocation6 + $0x20] sm:$0xff]  ;;  %v210_v34 = vld [vmem:[#allocation6 + $0x30] sm:$0xff]  ;;  %v163_v10 = vsub.f32 1.0, %v761_v5 }
  0x4d   :  { %v764_v7 = vsel %vm367_vm2, 1, %v673_v6  ;;  %v504_v12 = vpack.c.bf16 %v205_v9, %v204_v8  ;;  %v776_v18 = vsub.s32 0, %v772_v17  ;;  %v166_v19 = vsel %vm165_vm3, 1, %v673_v6  ;;  %v384_v22 = vld [vmem:[%s819_s2] ss:$0 sm:$0xff]  ;;  %v211_v35 = vld [vmem:[#allocation6 + $0x38] sm:$0xff] }
  0x4e   :  { %v189_v21 = vsub.s32 1, %v772_v17  ;;  %v209_v32 = vld [vmem:[#allocation6 + $0x28] sm:$0xff]  ;;  %v513_v36 = vpack.c.bf16 %v211_v35, %v210_v34  ;;  %v212_v37 = vld [vmem:[#allocation6 + $0x40] sm:$0xff]  ;;  %v214_v40 = vld [vmem:[#allocation6 + $0x50] sm:$0xff] }
  0x4f   :  { %428 = vmatpush3.bf16.msra.mxu0 %v564_v2  ;;  %505 = vmatpush3.bf16.msra.mxu1 %v504_v12  ;;  %v170_v20 = vrot.slane %v166_v19, %v776_v18  ;;  %v510_v33 = vpack.c.bf16 %v209_v32, %v208_v31  ;;  %v213_v38 = vld [vmem:[#allocation6 + $0x48] sm:$0xff]  ;;  %v215_v41 = vld [vmem:[#allocation6 + $0x58] sm:$0xff]  ;;  %v216_v43 = vld [vmem:[#allocation6 + $0x60] sm:$0xff]  ;;  %v164_v12 = vmul.f32 1e+30, %v163_v10  ;;  %v178_v13 = vrot.slane %v770_v16, %v776_v18 }
  0x50   :  { %527 = vmatprep.subr.bf16.mxu0 %v674_v11  ;;  %506 = vmatprep.subr.bf16.mxu1 %v674_v11  ;;  %v190_v24 = vrot.slane %v166_v19, %v189_v21  ;;  %v516_v39 = vpack.c.bf16 %v213_v38, %v212_v37  ;;  %v519_v42 = vpack.c.bf16 %v215_v41, %v214_v40  ;;  %v217_v44 = vld [vmem:[#allocation6 + $0x68] sm:$0xff]  ;;  %v218_v46 = vld [vmem:[#allocation6 + $0x70] sm:$0xff]  ;;  %v219_v47 = vld [vmem:[#allocation6 + $0x78] sm:$0xff] }
  0x51   :  { %vm171_vm4 = vcmp.eq.s32.totalorder %v170_v20, 1  ;;  %v522_v45 = vpack.c.bf16 %v217_v44, %v216_v43  ;;  %v525_v48 = vpack.c.bf16 %v219_v47, %v218_v46  ;;  %v148_v49 = vld [vmem:[#allocation7 + $0x8] sm:$0xff]  ;;  %v149_v50 = vld [vmem:[#allocation7 + $0x10] sm:$0xff]  ;;  %v150_v51 = vld [vmem:[#allocation7 + $0x18] sm:$0xff]  ;;  %v184_v15 = vrot.slane %v164_v12, %v776_v18 }
  0x52   :  { %430 = vmatmul.mubr.msk.bf16.vlgmr.msra.gmra.mrb[0].mxu0 %vm102_vm1, %v78_v4  ;;  %vm191_vm5 = vcmp.eq.s32.totalorder %v190_v24, 1  ;;  %v528_v52 = vpack.c.bf16 %v148_v49, %v770_v16  ;;  %v531_v53 = vpack.c.bf16 %v150_v51, %v149_v50  ;;  %v151_v54 = vld [vmem:[#allocation7 + $0x20] sm:$0xff]  ;;  %v152_v55 = vld [vmem:[#allocation7 + $0x28] sm:$0xff]  ;;  %v153_v57 = vld [vmem:[#allocation7 + $0x30] sm:$0xff]  ;;  %v198_v20 = vrot.slane %v770_v16, %v189_v21 }
  0x53   :  { %500 = vmatprep.mubr.msk.f32.mxu0 %vm672_vm0, %v671_v0  ;;  %508 = vmatpush3.bf16.msra.mxu1 %v507_v14  ;;  %v534_v56 = vpack.c.bf16 %v152_v55, %v151_v54  ;;  %v154_v58 = vld [vmem:[#allocation7 + $0x38] sm:$0xff]  ;;  %v155_v60 = vld [vmem:[#allocation7 + $0x40] sm:$0xff]  ;;  %v156_v61 = vld [vmem:[#allocation7 + $0x48] sm:$0xff]  ;;  %v373_v16 = vrot.slane %v764_v7, %v776_v18 }
  0x54   :  { %509 = vmatprep.subr.bf16.mxu1 %v674_v11  ;;  %529 = vmatpush3.bf16.msra.mxu0 %v528_v52  ;;  %v537_v59 = vpack.c.bf16 %v154_v58, %v153_v57  ;;  %v540_v62 = vpack.c.bf16 %v156_v61, %v155_v60  ;;  %v157_v63 = vld [vmem:[#allocation7 + $0x50] sm:$0xff]  ;;  %v158_v0 = vld [vmem:[#allocation7 + $0x58] sm:$0xff]  ;;  %v159_v2 = vld [vmem:[#allocation7 + $0x60] sm:$0xff] }
  0x55   :  { %530 = vmatprep.subr.bf16.mxu0 %v674_v11  ;;  %v543_v1 = vpack.c.bf16 %v158_v0, %v157_v63  ;;  %v160_v3 = vld [vmem:[#allocation7 + $0x68] sm:$0xff]  ;;  %v161_v6 = vld [vmem:[#allocation7 + $0x70] sm:$0xff]  ;;  %v162_v8 = vld [vmem:[#allocation7 + $0x78] sm:$0xff]  ;;  %vm374_vm6 = vcmp.eq.s32.totalorder %v373_v16, 1 }
  0x56   :  { %v546_v4 = vpack.c.bf16 %v160_v3, %v159_v2  ;;  %v549_v9 = vpack.c.bf16 %v162_v8, %v161_v6 }
  0x57   :  { %511 = vmatpush3.bf16.msra.mxu1 %v510_v33 }
  0x58   :  { %512 = vmatprep.subr.bf16.mxu1 %v674_v11  ;;  %532 = vmatpush3.bf16.msra.mxu0 %v531_v53 }
  0x59   :  { %533 = vmatprep.subr.bf16.mxu0 %v674_v11 }
  0x5b   :  { %514 = vmatpush3.bf16.msra.mxu1 %v513_v36 }
  0x5c   :  { %515 = vmatprep.subr.bf16.mxu1 %v674_v11  ;;  %535 = vmatpush3.bf16.msra.mxu0 %v534_v56 }
  0x5d   :  { %536 = vmatprep.subr.bf16.mxu0 %v674_v11 }
  0x5f   :  { %517 = vmatpush3.bf16.msra.mxu1 %v516_v39 }
  0x60   :  { %518 = vmatprep.subr.bf16.mxu1 %v674_v11  ;;  %538 = vmatpush3.bf16.msra.mxu0 %v537_v59 }
  0x61   :  { %539 = vmatprep.subr.bf16.mxu0 %v674_v11 }
  0x63   :  { %520 = vmatpush3.bf16.msra.mxu1 %v519_v42 }
  0x64   :  { %521 = vmatprep.subr.bf16.mxu1 %v674_v11  ;;  %541 = vmatpush3.bf16.msra.mxu0 %v540_v62 }
  0x65   :  { %542 = vmatprep.subr.bf16.mxu0 %v674_v11 }
  0x67   :  { %523 = vmatpush3.bf16.msra.mxu1 %v522_v45 }
  0x68   :  { %524 = vmatprep.subr.bf16.mxu1 %v674_v11  ;;  %544 = vmatpush3.bf16.msra.mxu0 %v543_v1 }
  0x69   :  { %545 = vmatprep.subr.bf16.mxu0 %v674_v11 }
  0x6b   :  { %526 = vmatpush3.bf16.msra.mxu1 %v525_v48 }
  0x6c   :  { %547 = vmatpush3.bf16.msra.mxu0 %v546_v4 }
  0x6d   :  { %548 = vmatprep.subr.bf16.mxu0 %v674_v11 }
  0x70   :  { %550 = vmatpush3.bf16.msra.mxu0 %v549_v9 }
 0x125   :  { %v140_v23 = vpop.f32.mrb[0].mxu0 }
 0x126   :  { %v785_v25 = vadd.f32 %v384_v22, %v140_v23  ;;  %v431_v26 = vpop.f32.mrb[1].mxu0 }
 0x127   :  { %v143_v27 = vpop.f32.mrb[2].mxu0 }
 0x128   :  { %v432_v28 = vpop.f32.mrb[3].mxu0  ;;  %v172_v29 = vsel %vm171_vm4, %v785_v25, -1e+30  ;;  %v192_v30 = vsel %vm191_vm5, %v785_v25, -1e+30 }
 0x129   :  { %173 = vmax.xlane.f32.xlu0 %v172_v29 }
 0x12d   :  { %193 = vmax.xlane.f32.xlu0 %v192_v30  ;;  %v294_v30 = vrot.slane %v163_v10, %v776_v18 }
 0x1b6   :  { %v174_v14 = vpop.xlane.xlu0 %173 }
 0x1b7   :  { %v179_v19 = vmul.f32 %v178_v13, %v174_v14 }
 0x1b9   :  { %v186_v23 = vadd.f32 %v184_v15, %v179_v19 }
 0x1ba   :  { %v194_v22 = vpop.xlane.xlu0 %193 }
 0x1bb   :  { %v199_v24 = vmul.f32 %v198_v20, %v194_v22 }
 0x1bd   :  { %v200_v26 = vadd.f32 %v199_v24, %v186_v23 }
 0x1bf   :  { %v201_v11 = vsub.f32 %v785_v25, %v200_v26 }
 0x1c1   :  { %v202_v27 = vmul.f32 1.442695, %v201_v11 }
 0x1c3   :  { %565 = vpow2.f32 %v202_v27 }
 0x1cd   :  { %v566_v5 = vpop.eup %565 }
 0x1ce   :  { %466 = vmatmul.mubr.f32.vlgmr.msra.gmra.mrb[0].mxu1 %v566_v5 }
 0x2a1   :  { %v286_v28 = vpop.f32.mrb[0].mxu1 }
 0x2a2   :  { %v467_v29 = vpop.f32.mrb[1].mxu1  ;;  %501 = vmatmul.mubr.f32.vlgmr.msra.gmra.mrb[4].mxu0 %v286_v28 }
 0x375   :  { %v362_v31 = vpop.f32.mrb[4].mxu0 }
 0x376   :  { %v363_v32 = vadd.f32 %v362_v31, %v294_v30  ;;  %v502_v17 = vpop.f32.mrb[5].mxu0 }
 0x378   :  { %567 = vrcp.f32 %v363_v32 }
 0x382   :  { %v568_v21 = vpop.eup %567 }
 0x383   :  { %v368_v33 = vmul.f32 %v568_v21, %v566_v5 }
 0x385   :  { %v375_v34 = vsel %vm374_vm6, %v368_v33, %v785_v25 }
 0x386   :  { %376 = vst [vmem:[%s823_s6] sm:$0xff] %v375_v34 }
 0x387   :  { %381 = vsyncpa [#allocation3], 1 }
 0x388   :  { %382 = vsyncpa [#allocation5], 1 }
 0x389   :  { %383 = vsyncpa [#allocation8], 1 }

</bundles_post_ra>
